<compile_context>
chip_gen: v7x
topology: tpu7x:2x2x1
jax: 0.10.0
libtpu: 0.0.40
codegen_flags: <defaults>
</compile_context>

<pallas_src>
import functools

import jax
import jax.numpy as jnp
from jax.experimental import pallas as pl
from jax.experimental.pallas import tpu as pltpu

# ----- model sizes (synthetic stand-ins for the `globals` module) ---------------
STOCH_VECTOR_SIZE = 32
RECURRENT_VECTOR_SIZE = 96
IN_DIM = STOCH_VECTOR_SIZE + RECURRENT_VECTOR_SIZE      # 128
MLP_SIZE = 128                                          # hidden_size
BATCH = 200                                             # not a tile multiple -> exercises padding
TILE_M = 128                                            # rows per grid step (use 256-1024 in prod)


# ----- Pallas kernel: fused 3-layer MLP --------------------------------------------------
def value_net_kernel(x_ref, w1_ref, b1_ref, w2_ref, b2_ref, w3_ref, b3_ref, o_ref):
    x = x_ref[...]                                                   # (TM, IN_DIM) f32

    # fc1 + relu : bf16 MXU operands, f32 accumulation, f32 bias/relu
    h1 = jnp.dot(x.astype(jnp.bfloat16), w1_ref[...],
                 preferred_element_type=jnp.float32) + b1_ref[...]
    h1 = jnp.maximum(h1, 0.0)

    # fc2 + relu
    h2 = jnp.dot(h1.astype(jnp.bfloat16), w2_ref[...],
                 preferred_element_type=jnp.float32) + b2_ref[...]
    h2 = jnp.maximum(h2, 0.0)

    # fc3 (single output column): VPU multiply + lane reduction, no MXU pass
    out = jnp.sum(h2 * w3_ref[...], axis=-1, keepdims=True) + b3_ref[...]
    o_ref[...] = out.astype(o_ref.dtype)


@functools.partial(jax.jit, static_argnames=("tile_m",))
def value_network_forward(x, w1, b1, w2, b2, w3_row, b3, *, tile_m=TILE_M):
    """x: (B, IN_DIM) f32. w1/w2: (in, out) bf16. b1/b2: (1, H) f32. w3_row: (1, H) f32. b3: (1, 1) f32."""
    B, in_dim = x.shape
    hid = w1.shape[1]

    # pad batch to a multiple of the row tile (padded rows are sliced off at the end)
    b_pad = -(-B // tile_m) * tile_m
    if b_pad != B:
        x = jnp.pad(x, ((0, b_pad - B), (0, 0)))
    grid = (b_pad // tile_m,)

    resident = lambda i: (0, 0)          # same block every grid step -> weights DMA'd once

    cost = pl.CostEstimate(
        flops=2 * b_pad * (in_dim * hid + hid * hid + hid),
        transcendentals=0,
        bytes_accessed=(x.size * 4 + w1.size * 2 + w2.size * 2
                        + (b1.size + b2.size + w3_row.size + b3.size) * 4
                        + b_pad * 4),
    )

    out = pl.pallas_call(
        value_net_kernel,
        out_shape=jax.ShapeDtypeStruct((b_pad, 1), jnp.float32),
        grid=grid,
        in_specs=[
            pl.BlockSpec((tile_m, in_dim), lambda i: (i, 0)),   # activation row tile
            pl.BlockSpec((in_dim, hid), resident),              # w1 (bf16), VMEM-resident
            pl.BlockSpec((1, hid), resident),                   # b1
            pl.BlockSpec((hid, hid), resident),                 # w2 (bf16), VMEM-resident
            pl.BlockSpec((1, hid), resident),                   # b2
            pl.BlockSpec((1, hid), resident),                   # w3 as a lane row
            pl.BlockSpec((1, 1), resident),                     # b3
        ],
        out_specs=pl.BlockSpec((tile_m, 1), lambda i: (i, 0)),
        compiler_params=pltpu.CompilerParams(
            dimension_semantics=("parallel",)),                 # v7x: shard batch across 2 TCs
        cost_estimate=cost,
    )(x, w1, b1, w2, b2, w3_row, b3)

    return out[:B]


# ----- deterministic parameter init (mirrors ValueNetwork.weight_init) ----------
def init_linear(key, fan_in, fan_out):
    # variance = sqrt(2 / (fan_in + fan_out)); W ~ N(0, 0.1*var), b ~ N(0, 0.001*var)
    variance = (2.0 / (fan_in + fan_out)) ** 0.5
    kw, kb = jax.random.split(key)
    # torch weight is (out, in); we store transposed (in, out) for the kernel.
    w_t = (0.1 * variance) * jax.random.normal(kw, (fan_in, fan_out), jnp.float32)
    b = (0.001 * variance) * jax.random.normal(kb, (fan_out,), jnp.float32)
    return w_t, b.reshape(1, fan_out)


if __name__ == "__main__":
    root = jax.random.PRNGKey(0)
    k_x, k1, k2, k3 = jax.random.split(root, 4)

    x = jax.random.normal(k_x, (BATCH, IN_DIM), jnp.float32)
    w1f, b1 = init_linear(k1, IN_DIM, MLP_SIZE)
    w2f, b2 = init_linear(k2, MLP_SIZE, MLP_SIZE)
    w3f, b3 = init_linear(k3, MLP_SIZE, 1)

    # matmul operands in bf16 (halves weight DMA); biases / fc3 row stay f32
    w1 = w1f.astype(jnp.bfloat16)
    w2 = w2f.astype(jnp.bfloat16)
    w3_row = w3f.reshape(1, MLP_SIZE)        # (128, 1) -> (1, 128) row for the VPU reduce
    b3 = b3.reshape(1, 1)

    out = value_network_forward(x, w1, b1, w2, b2, w3_row, b3)
    out = jax.block_until_ready(out)
    assert out.shape == (BATCH, 1)

    # reference matching the in-kernel numerics (bf16 matmul operands, f32 accumulation)
    h1 = jnp.maximum(jnp.dot(x.astype(jnp.bfloat16), w1,
                             preferred_element_type=jnp.float32) + b1, 0.0)
    h2 = jnp.maximum(jnp.dot(h1.astype(jnp.bfloat16), w2,
                             preferred_element_type=jnp.float32) + b2, 0.0)
    ref_bf16 = jnp.sum(h2 * w3_row, axis=-1, keepdims=True) + b3
    assert jnp.allclose(out, ref_bf16, atol=1e-4, rtol=1e-3)

    # sanity check against the original full-f32 module semantics (looser, bf16 operands)
    ref32 = jnp.maximum(x @ w1f + b1, 0.0)
    ref32 = jnp.maximum(ref32 @ w2f + b2, 0.0)
    ref32 = ref32 @ w3f + b3
    assert jnp.allclose(out, ref32, atol=2e-3, rtol=2e-2)

    print("KERNEL_OK")
</pallas_src>

<mosaic_0001>
module attributes {stable_mosaic.version = 11 : i64} {
  func.func @value_net_kernel(%arg0: i32, %arg1: memref<128x128xf32, #tpu.memory_space<vmem>>, %arg2: memref<128x128xbf16, #tpu.memory_space<vmem>>, %arg3: memref<1x128xf32, #tpu.memory_space<vmem>>, %arg4: memref<128x128xbf16, #tpu.memory_space<vmem>>, %arg5: memref<1x128xf32, #tpu.memory_space<vmem>>, %arg6: memref<1x128xf32, #tpu.memory_space<vmem>>, %arg7: memref<1x1xf32, #tpu.memory_space<vmem>>, %arg8: memref<128x1xf32, #tpu.memory_space<vmem>>) attributes {dimension_semantics = [#tpu.dimension_semantics<parallel>], iteration_bounds = array<i64: 2>, scalar_prefetch = 0 : i64, scratch_operands = 0 : i64, tpu.core_type = #tpu.core_type<tc>, window_params = [{transform_indices = @transform_0, window_bounds = array<i64: 128, 128>}, {pipeline_mode = #tpu.pipeline_mode<synchronous>, transform_indices = @transform_1, window_bounds = array<i64: 128, 128>}, {pipeline_mode = #tpu.pipeline_mode<synchronous>, transform_indices = @transform_2, window_bounds = array<i64: 1, 128>}, {pipeline_mode = #tpu.pipeline_mode<synchronous>, transform_indices = @transform_3, window_bounds = array<i64: 128, 128>}, {pipeline_mode = #tpu.pipeline_mode<synchronous>, transform_indices = @transform_4, window_bounds = array<i64: 1, 128>}, {pipeline_mode = #tpu.pipeline_mode<synchronous>, transform_indices = @transform_5, window_bounds = array<i64: 1, 128>}, {pipeline_mode = #tpu.pipeline_mode<synchronous>, transform_indices = @transform_6, window_bounds = array<i64: 1, 1>}, {transform_indices = @transform_7, window_bounds = array<i64: 128, 1>}]} {
    %c0 = arith.constant 0 : index
    %c0_0 = arith.constant 0 : index
    %0 = vector.load %arg1[%c0, %c0_0] : memref<128x128xf32, #tpu.memory_space<vmem>>, vector<128x128xf32>
    %1 = arith.truncf %0 : vector<128x128xf32> to vector<128x128xbf16>
    %c0_1 = arith.constant 0 : index
    %c0_2 = arith.constant 0 : index
    %2 = vector.load %arg2[%c0_1, %c0_2] : memref<128x128xbf16, #tpu.memory_space<vmem>>, vector<128x128xbf16>
    %cst = arith.constant dense<0.000000e+00> : vector<128x128xf32>
    %3 = tpu.matmul %1, %2, %cst {dimension_numbers = #tpu.dot_dimension_numbers<[1], [0], [0], [1], [0, 0, 1, 1], [], []>} : vector<128x128xbf16>, vector<128x128xbf16>, vector<128x128xf32> -> vector<128x128xf32>
    %c0_3 = arith.constant 0 : index
    %c0_4 = arith.constant 0 : index
    %4 = vector.load %arg3[%c0_3, %c0_4] : memref<1x128xf32, #tpu.memory_space<vmem>>, vector<1x128xf32>
    %5 = vector.broadcast %4 : vector<1x128xf32> to vector<128x128xf32>
    %6 = arith.addf %3, %5 : vector<128x128xf32>
    %cst_5 = arith.constant 0.000000e+00 : f32
    %7 = vector.broadcast %cst_5 : f32 to vector<128x128xf32>
    %8 = arith.maximumf %6, %7 : vector<128x128xf32>
    %9 = arith.truncf %8 : vector<128x128xf32> to vector<128x128xbf16>
    %c0_6 = arith.constant 0 : index
    %c0_7 = arith.constant 0 : index
    %10 = vector.load %arg4[%c0_6, %c0_7] : memref<128x128xbf16, #tpu.memory_space<vmem>>, vector<128x128xbf16>
    %cst_8 = arith.constant dense<0.000000e+00> : vector<128x128xf32>
    %11 = tpu.matmul %9, %10, %cst_8 {dimension_numbers = #tpu.dot_dimension_numbers<[1], [0], [0], [1], [0, 0, 1, 1], [], []>} : vector<128x128xbf16>, vector<128x128xbf16>, vector<128x128xf32> -> vector<128x128xf32>
    %c0_9 = arith.constant 0 : index
    %c0_10 = arith.constant 0 : index
    %12 = vector.load %arg5[%c0_9, %c0_10] : memref<1x128xf32, #tpu.memory_space<vmem>>, vector<1x128xf32>
    %13 = vector.broadcast %12 : vector<1x128xf32> to vector<128x128xf32>
    %14 = arith.addf %11, %13 : vector<128x128xf32>
    %cst_11 = arith.constant 0.000000e+00 : f32
    %15 = vector.broadcast %cst_11 : f32 to vector<128x128xf32>
    %16 = arith.maximumf %14, %15 : vector<128x128xf32>
    %c0_12 = arith.constant 0 : index
    %c0_13 = arith.constant 0 : index
    %17 = vector.load %arg6[%c0_12, %c0_13] : memref<1x128xf32, #tpu.memory_space<vmem>>, vector<1x128xf32>
    %18 = vector.broadcast %17 : vector<1x128xf32> to vector<128x128xf32>
    %19 = arith.mulf %16, %18 : vector<128x128xf32>
    %cst_14 = arith.constant dense<0.000000e+00> : vector<128xf32>
    %20 = vector.multi_reduction <add>, %19, %cst_14 [1] : vector<128x128xf32> to vector<128xf32>
    %21 = vector.shape_cast %20 : vector<128xf32> to vector<128x1xf32>
    %c0_15 = arith.constant 0 : index
    %c0_16 = arith.constant 0 : index
    %22 = vector.load %arg7[%c0_15, %c0_16] : memref<1x1xf32, #tpu.memory_space<vmem>>, vector<1x1xf32>
    %23 = vector.broadcast %22 : vector<1x1xf32> to vector<128x1xf32>
    %24 = arith.addf %21, %23 : vector<128x1xf32>
    %c0_17 = arith.constant 0 : index
    %c0_18 = arith.constant 0 : index
    %25 = vector.load %arg8[%c0_17, %c0_18] : memref<128x1xf32, #tpu.memory_space<vmem>>, vector<128x1xf32>
    tpu.vector_store %arg8[%c0_17, %c0_18], %24 {strides = array<i32>} : memref<128x1xf32, #tpu.memory_space<vmem>>, vector<128x1xf32>,
    return
  }
  func.func @transform_0(%arg0: i32) -> (i32, i32) {
    %c0_i32 = arith.constant 0 : i32
    %c0_i32_0 = arith.constant 0 : i32
    return %arg0, %c0_i32 : i32, i32
  }
  func.func @transform_1(%arg0: i32) -> (i32, i32) {
    %c0_i32 = arith.constant 0 : i32
    %c0_i32_0 = arith.constant 0 : i32
    %c0_i32_1 = arith.constant 0 : i32
    return %c0_i32, %c0_i32_0 : i32, i32
  }
  func.func @transform_2(%arg0: i32) -> (i32, i32) {
    %c0_i32 = arith.constant 0 : i32
    %c0_i32_0 = arith.constant 0 : i32
    %c0_i32_1 = arith.constant 0 : i32
    return %c0_i32, %c0_i32_0 : i32, i32
  }
  func.func @transform_3(%arg0: i32) -> (i32, i32) {
    %c0_i32 = arith.constant 0 : i32
    %c0_i32_0 = arith.constant 0 : i32
    %c0_i32_1 = arith.constant 0 : i32
    return %c0_i32, %c0_i32_0 : i32, i32
  }
  func.func @transform_4(%arg0: i32) -> (i32, i32) {
    %c0_i32 = arith.constant 0 : i32
    %c0_i32_0 = arith.constant 0 : i32
    %c0_i32_1 = arith.constant 0 : i32
    return %c0_i32, %c0_i32_0 : i32, i32
  }
  func.func @transform_5(%arg0: i32) -> (i32, i32) {
    %c0_i32 = arith.constant 0 : i32
    %c0_i32_0 = arith.constant 0 : i32
    %c0_i32_1 = arith.constant 0 : i32
    return %c0_i32, %c0_i32_0 : i32, i32
  }
  func.func @transform_6(%arg0: i32) -> (i32, i32) {
    %c0_i32 = arith.constant 0 : i32
    %c0_i32_0 = arith.constant 0 : i32
    %c0_i32_1 = arith.constant 0 : i32
    return %c0_i32, %c0_i32_0 : i32, i32
  }
  func.func @transform_7(%arg0: i32) -> (i32, i32) {
    %c0_i32 = arith.constant 0 : i32
    %c0_i32_0 = arith.constant 0 : i32
    return %arg0, %c0_i32 : i32, i32
  }
}

</mosaic_0001>

<bundles_post_ra>
// kernel: value_network_forward.1
= control target key start
LH: loop header
LB: loop body
LE: loop exit
PB: predicated region body
PF: predicated region fallthrough
CT: control target
= control target key end

     0   :  { %s1038_s26 = smov 0   ;;  %s1207_s0 = inlined_call_operand.vmem [shape: f32[256,128], index: 0, kind: input, shape index: {}]   ;;  %s1208_s1 = inlined_call_operand.vmem [shape: bf16[128,128], index: 1, kind: input, shape index: {}]   ;;  %s1209_s2 = inlined_call_operand.vmem [shape: f32[1,128], index: 2, kind: input, shape index: {}]   ;;  %s1210_s3 = inlined_call_operand.vmem [shape: bf16[128,128], index: 3, kind: input, shape index: {}]   ;;  %s1211_s4 = inlined_call_operand.vmem [shape: f32[1,128], index: 4, kind: input, shape index: {}]   ;;  %s1212_s5 = inlined_call_operand.vmem [shape: f32[1,128], index: 5, kind: input, shape index: {}]   ;;  %s1213_s6 = inlined_call_operand.<no memory space> [shape: f32[1,1], index: 6, kind: input, shape index: {}]   ;;  %s1214_s7 = inlined_call_operand.vmem [shape: f32[256,1], index: 7, kind: output, shape index: {}]  }
   0x1   :  { %v12_v0 = vstv %s1213_s6 }
   0x2   :  { %13 = vst [vmem:[#allocation2] sm:$0x1] %v12_v0 }
   0x3 LB: > { %s836_s27 = sadd.s32 4294967295, %s993_s26   ;;  %p840_p0 = scmp.ge.s32.totalorder %s993_s26, 1  ;;  %s993_s26 = sphi %s1038_s26, %s19_s26  }
   0x4   : > { %p240_p1 = scmp.lt.s32.totalorder %s993_s26, 3 }
   0x6   : > { %p241_p2 = pnand %p840_p0, %p240_p1 }
   0x7   : > { %v971_v1 = vld [vmem:[%s1208_s1] sm:$0xff] (!%p241_p2)   ;;  %s841_s6 = sshll.u32 (!%p241_p2), %s836_s27, 4  ;;  %v972_v2 = vld [vmem:[%s1208_s1 + $0x8] sm:$0xff] (!%p241_p2)   ;;  %v973_v3 = vld [vmem:[%s1208_s1 + $0x10] sm:$0xff] (!%p241_p2)   ;;  %vm763_vm0 = vcmask (!%p241_p2), 7168  }
   0x8   : > { %244 = sbr.rel (%p241_p2) target bundleno = 656 (0x290), region = 48  ;;  %p273_p3 = scmp.lt.s32.totalorder (!%p241_p2), %s841_s6, 31  ;;  %899 = vmatprep.subr.bf16.mxu0 (!%p241_p2), %v971_v1  ;;  %v974_v4 = vld [vmem:[%s1208_s1 + $0x18] sm:$0xff] (!%p241_p2)   ;;  %v975_v8 = vld [vmem:[%s1208_s1 + $0x20] sm:$0xff] (!%p241_p2)   ;;  %v980_v10 = vld [vmem:[%s1210_s3 + $0x8] sm:$0xff] (!%p241_p2)  }
   0x9   : > { %900 = vmatpush3.bf16.msra.mxu0 (!%p241_p2), %v971_v1  ;;  %v979_v9 = vld [vmem:[%s1210_s3] sm:$0xff] (!%p241_p2)   ;;  %v976_v11 = vld [vmem:[%s1208_s1 + $0x28] sm:$0xff] (!%p241_p2)   ;;  %v981_v12 = vld [vmem:[%s1210_s3 + $0x10] sm:$0xff] (!%p241_p2)  }
   0xa   : > { %901 = vmatprep.subr.bf16.mxu0 (!%p241_p2), %v972_v2  ;;  %931 = vmatprep.subr.bf16.mxu1 (!%p241_p2), %v979_v9  ;;  %v977_v13 = vld [vmem:[%s1208_s1 + $0x30] sm:$0xff] (!%p241_p2)   ;;  %v982_v14 = vld [vmem:[%s1210_s3 + $0x18] sm:$0xff] (!%p241_p2)   ;;  %v983_v16 = vld [vmem:[%s1210_s3 + $0x20] sm:$0xff] (!%p241_p2)  }
   0xb   : > { %932 = vmatpush3.bf16.msra.mxu1 (!%p241_p2), %v979_v9  ;;  %v978_v15 = vld [vmem:[%s1208_s1 + $0x38] sm:$0xff] (!%p241_p2)   ;;  %v984_v22 = vld [vmem:[%s1210_s3 + $0x28] sm:$0xff] (!%p241_p2)   ;;  %v985_v39 = vld [vmem:[%s1210_s3 + $0x30] sm:$0xff] (!%p241_p2)  }
   0xc   : > { %933 = vmatprep.subr.bf16.mxu1 (!%p241_p2), %v980_v10  ;;  %v986_v40 = vld [vmem:[%s1210_s3 + $0x38] sm:$0xff] (!%p241_p2)   ;;  %v845_v41 = vld [vmem:[%s1209_s2] ss:$0 sm:$0xff] (!%p241_p2) }
   0xd   : > { %902 = vmatpush3.bf16.msra.mxu0 (!%p241_p2), %v972_v2 }
   0xe   : > { %903 = vmatprep.subr.bf16.mxu0 (!%p241_p2), %v973_v3 }
   0xf   : > { %s1216_s6 = smov (!%p273_p3, %s841_s6), 31  ;;  %934 = vmatpush3.bf16.msra.mxu1 %v980_v10 }
  0x10   : > { %s842_s11 = sshll.u32 %s1216_s6, 3  ;;  %935 = vmatprep.subr.bf16.mxu1 %v981_v12 }
  0x11   : > { %s1063_s14 = scalar_lea.vmem %s1207_s0, %s842_s11  ;;  %904 = vmatpush3.bf16.msra.mxu0 %v973_v3  ;;  %s1170_s29 = scalar_lea.vmem %s1214_s7, %s842_s11 }
  0x12   : > { %v285_v5 = vld [vmem:[%s1063_s14] sm:$0xff]  ;;  %v286_v6 = vld [vmem:[%s1063_s14 + $0x8] sm:$0xff]  ;;  %905 = vmatprep.subr.bf16.mxu0 %v974_v4  ;;  %v287_v17 = vld [vmem:[%s1063_s14 + $0x10] sm:$0xff] }
  0x13   : > { %v301_v7 = vpack.c.bf16 %v286_v6, %v285_v5  ;;  %936 = vmatpush3.bf16.msra.mxu1 %v981_v12  ;;  %v288_v18 = vld [vmem:[%s1063_s14 + $0x18] sm:$0xff]  ;;  %v289_v19 = vld [vmem:[%s1063_s14 + $0x20] sm:$0xff]  ;;  %v290_v20 = vld [vmem:[%s1063_s14 + $0x28] sm:$0xff] }
  0x14   : > { %937 = vmatprep.subr.bf16.mxu1 %v982_v14  ;;  %v302_v21 = vpack.c.bf16 %v288_v18, %v287_v17  ;;  %v303_v23 = vpack.c.bf16 %v290_v20, %v289_v19  ;;  %v291_v24 = vld [vmem:[%s1063_s14 + $0x30] sm:$0xff]  ;;  %v292_v25 = vld [vmem:[%s1063_s14 + $0x38] sm:$0xff]  ;;  %v293_v26 = vld [vmem:[%s1063_s14 + $0x40] sm:$0xff] }
  0x15   : > { %915 = vmatprep.mubr.bf16.mxu0 %v301_v7  ;;  %906 = vmatpush3.bf16.msra.mxu0 %v974_v4  ;;  %v294_v27 = vld [vmem:[%s1063_s14 + $0x48] sm:$0xff]  ;;  %v304_v28 = vpack.c.bf16 %v292_v25, %v291_v24  ;;  %v295_v30 = vld [vmem:[%s1063_s14 + $0x50] sm:$0xff]  ;;  %v296_v31 = vld [vmem:[%s1063_s14 + $0x58] sm:$0xff] }
  0x16   : > { %907 = vmatprep.subr.bf16.mxu0 %v975_v8  ;;  %v305_v29 = vpack.c.bf16 %v294_v27, %v293_v26  ;;  %v297_v32 = vld [vmem:[%s1063_s14 + $0x60] sm:$0xff]  ;;  %v298_v33 = vld [vmem:[%s1063_s14 + $0x68] sm:$0xff]  ;;  %v306_v34 = vpack.c.bf16 %v296_v31, %v295_v30  ;;  %v299_v36 = vld [vmem:[%s1063_s14 + $0x70] sm:$0xff] }
  0x17   : > { %938 = vmatpush3.bf16.msra.mxu1 %v982_v14  ;;  %v307_v35 = vpack.c.bf16 %v298_v33, %v297_v32  ;;  %v300_v37 = vld [vmem:[%s1063_s14 + $0x78] sm:$0xff] }
  0x18   : > { %939 = vmatprep.subr.bf16.mxu1 %v983_v16  ;;  %v308_v38 = vpack.c.bf16 %v300_v37, %v299_v36 }
  0x19   : > { %908 = vmatpush3.bf16.msra.mxu0 %v975_v8 }
  0x1a   : > { %909 = vmatprep.subr.bf16.mxu0 %v976_v11 }
  0x1b   : > { %940 = vmatpush3.bf16.msra.mxu1 %v983_v16 }
  0x1c   : > { %941 = vmatprep.subr.bf16.mxu1 %v984_v22 }
  0x1d   : > { %910 = vmatpush3.bf16.msra.mxu0 %v976_v11 }
  0x1e   : > { %911 = vmatprep.subr.bf16.mxu0 %v977_v13 }
  0x1f   : > { %942 = vmatpush3.bf16.msra.mxu1 %v984_v22 }
  0x20   : > { %943 = vmatprep.subr.bf16.mxu1 %v985_v39 }
  0x21   : > { %912 = vmatpush3.bf16.msra.mxu0 %v977_v13 }
  0x22   : > { %913 = vmatprep.subr.bf16.mxu0 %v978_v15 }
  0x23   : > { %944 = vmatpush3.bf16.msra.mxu1 %v985_v39 }
  0x24   : > { %945 = vmatprep.subr.bf16.mxu1 %v986_v40 }
  0x25   : > { %914 = vmatpush3.bf16.msra.mxu0 %v978_v15 }
  0x27   : > { %946 = vmatpush3.bf16.msra.mxu1 %v986_v40  ;;  %v1133_v40 = vld [vmem:[%s1212_s5] ss:$0 sm:$0xff] }
  0x28   : > { %916 = vmatmul.mubr.bf16.vlgmr.msra.gmra.mrb[0].mxu0 %v302_v21 }
  0x29   : > { %919 = vmatprep.mubr.bf16.mxu0 %v303_v23 }
  0x30   : > { %920 = vmatmul.mubr.bf16.gmra.mrb[4].mxu0 %v304_v28 }
  0x31   : > { %923 = vmatprep.mubr.bf16.mxu0 %v305_v29 }
  0x38   : > { %924 = vmatmul.mubr.bf16.gmra.mrb[8].mxu0 %v306_v34  ;;  %v1126_v34 = vld [vmem:[%s1211_s4] ss:$0 sm:$0xff] }
  0x39   : > { %927 = vmatprep.mubr.bf16.mxu0 %v307_v35 }
  0x40   : > { %928 = vmatmul.mubr.bf16.gmra.mrb[12].mxu0 %v308_v38 }
  0xfb   : > { %v917_v42 = vpop.f32.mrb[0].mxu0 }
  0xfc   : > { %v423_v43 = vadd.f32 %v917_v42, %v845_v41  ;;  %v414_v44 = vpop.f32.mrb[1].mxu0 }
  0xfd   : > { %v415_v45 = vadd.f32 %v845_v41, %v414_v44  ;;  %v918_v46 = vpop.f32.mrb[2].mxu0 }
  0xfe   : > { %v426_v47 = vadd.f32 %v918_v46, %v845_v41  ;;  %v417_v48 = vpop.f32.mrb[3].mxu0  ;;  %v479_v50 = vmax.f32 %v423_v43, 0.0 }
  0xff   : > { %v418_v49 = vadd.f32 %v845_v41, %v417_v48  ;;  %v477_v52 = vmax.f32 %v415_v45, 0.0 }
 0x100   : > { %v480_v51 = vmax.f32 %v426_v47, 0.0 }
 0x101   : > { %v478_v53 = vmax.f32 %v418_v49, 0.0 }
 0x102   : > { %v494_v54 = vpack.c.bf16 %v480_v51, %v479_v50 }
 0x103   : > { %v921_v55 = vpop.f32.mrb[4].mxu0  ;;  %v493_v56 = vpack.c.bf16 %v478_v53, %v477_v52 }
 0x104   : > { %v439_v57 = vadd.f32 %v921_v55, %v845_v41  ;;  %v430_v58 = vpop.f32.mrb[5].mxu0 }
 0x105   : > { %v431_v59 = vadd.f32 %v845_v41, %v430_v58  ;;  %v922_v60 = vpop.f32.mrb[6].mxu0  ;;  %947 = vmatprep.mubr.bf16.mxu1 %v493_v56 }
 0x106   : > { %v442_v61 = vadd.f32 %v922_v60, %v845_v41  ;;  %v433_v62 = vpop.f32.mrb[7].mxu0  ;;  %948 = vmatmul.mubr.bf16.vlgmr.msra.gmra.mrb[0].mxu1 %v494_v54  ;;  %v483_v0 = vmax.f32 %v439_v57, 0.0 }
 0x107   : > { %v434_v63 = vadd.f32 %v845_v41, %v433_v62  ;;  %v481_v2 = vmax.f32 %v431_v59, 0.0 }
 0x108   : > { %v484_v1 = vmax.f32 %v442_v61, 0.0 }
 0x109   : > { %v482_v3 = vmax.f32 %v434_v63, 0.0 }
 0x10a   : > { %v496_v4 = vpack.c.bf16 %v484_v1, %v483_v0 }
 0x10b   : > { %v495_v5 = vpack.c.bf16 %v482_v3, %v481_v2  ;;  %v925_v6 = vpop.f32.mrb[8].mxu0 }
 0x10c   : > { %v455_v7 = vadd.f32 %v925_v6, %v845_v41  ;;  %v446_v8 = vpop.f32.mrb[9].mxu0 }
 0x10d   : > { %v447_v9 = vadd.f32 %v845_v41, %v446_v8  ;;  %v926_v10 = vpop.f32.mrb[10].mxu0  ;;  %951 = vmatprep.mubr.bf16.mxu1 %v495_v5 }
 0x10e   : > { %v458_v11 = vadd.f32 %v926_v10, %v845_v41  ;;  %v449_v12 = vpop.f32.mrb[11].mxu0  ;;  %952 = vmatmul.mubr.bf16.gmra.mrb[4].mxu1 %v496_v4  ;;  %v487_v14 = vmax.f32 %v455_v7, 0.0 }
 0x10f   : > { %v450_v13 = vadd.f32 %v845_v41, %v449_v12  ;;  %v485_v16 = vmax.f32 %v447_v9, 0.0 }
 0x110   : > { %v488_v15 = vmax.f32 %v458_v11, 0.0 }
 0x111   : > { %v486_v17 = vmax.f32 %v450_v13, 0.0 }
 0x112   : > { %v498_v18 = vpack.c.bf16 %v488_v15, %v487_v14 }
 0x113   : > { %v497_v19 = vpack.c.bf16 %v486_v17, %v485_v16  ;;  %v929_v20 = vpop.f32.mrb[12].mxu0 }
 0x114   : > { %v471_v21 = vadd.f32 %v929_v20, %v845_v41  ;;  %v462_v22 = vpop.f32.mrb[13].mxu0 }
 0x115   : > { %v463_v23 = vadd.f32 %v845_v41, %v462_v22  ;;  %v930_v24 = vpop.f32.mrb[14].mxu0  ;;  %955 = vmatprep.mubr.bf16.mxu1 %v497_v19 }
 0x116   : > { %v474_v25 = vadd.f32 %v930_v24, %v845_v41  ;;  %v465_v26 = vpop.f32.mrb[15].mxu0  ;;  %956 = vmatmul.mubr.bf16.gmra.mrb[8].mxu1 %v498_v18  ;;  %v491_v28 = vmax.f32 %v471_v21, 0.0 }
 0x117   : > { %v466_v27 = vadd.f32 %v845_v41, %v465_v26  ;;  %v489_v30 = vmax.f32 %v463_v23, 0.0 }
 0x118   : > { %v492_v29 = vmax.f32 %v474_v25, 0.0 }
 0x119   : > { %v490_v31 = vmax.f32 %v466_v27, 0.0 }
 0x11a   : > { %v500_v32 = vpack.c.bf16 %v492_v29, %v491_v28 }
 0x11b   : > { %v499_v33 = vpack.c.bf16 %v490_v31, %v489_v30 }
 0x11d   : > { %959 = vmatprep.mubr.bf16.mxu1 %v499_v33 }
 0x11e   : > { %960 = vmatmul.mubr.bf16.gmra.mrb[12].mxu1 %v500_v32 }
 0x1d9   : > { %v949_v35 = vpop.f32.mrb[0].mxu1 }
 0x1da   : > { %v615_v36 = vadd.f32 %v949_v35, %v1126_v34  ;;  %v606_v37 = vpop.f32.mrb[1].mxu1 }
 0x1db   : > { %v607_v38 = vadd.f32 %v1126_v34, %v606_v37  ;;  %v950_v39 = vpop.f32.mrb[2].mxu1  ;;  %v864_v37 = vld [vmem:[#allocation2] ss:$0 sm:$0xff] }
 0x1dc   : > { %v671_v41 = vmax.f32 %v615_v36, 0.0  ;;  %v618_v42 = vadd.f32 %v950_v39, %v1126_v34  ;;  %v609_v43 = vpop.f32.mrb[3].mxu1 }
 0x1dd   : > { %v669_v44 = vmax.f32 %v607_v38, 0.0  ;;  %v610_v45 = vadd.f32 %v1126_v34, %v609_v43 }
 0x1de   : > { %v672_v46 = vmax.f32 %v618_v42, 0.0  ;;  %v694_v47 = vmul.f32 %v1133_v40, %v671_v41 }
 0x1df   : > { %v670_v48 = vmax.f32 %v610_v45, 0.0  ;;  %v692_v49 = vmul.f32 %v1133_v40, %v669_v44 }
 0x1e0   : > { %712 = vadd.xlane.f32.xlu1 %v694_v47  ;;  %v695_v53 = vmul.f32 %v1133_v40, %v672_v46 }
 0x1e1   : > { %v953_v50 = vpop.f32.mrb[4].mxu1  ;;  %708 = vadd.xlane.f32.xlu0 %v692_v49  ;;  %v693_v56 = vmul.f32 %v1133_v40, %v670_v48 }
 0x1e2   : > { %v631_v51 = vadd.f32 %v953_v50, %v1126_v34  ;;  %v622_v52 = vpop.f32.mrb[5].mxu1 }
 0x1e3   : > { %v623_v54 = vadd.f32 %v1126_v34, %v622_v52  ;;  %v954_v55 = vpop.f32.mrb[6].mxu1 }
 0x1e4   : > { %v675_v57 = vmax.f32 %v631_v51, 0.0  ;;  %v634_v58 = vadd.f32 %v954_v55, %v1126_v34  ;;  %714 = vadd.xlane.f32.xlu1 %v695_v53  ;;  %v625_v59 = vpop.f32.mrb[7].mxu1 }
 0x1e5   : > { %v626_v60 = vadd.f32 %v1126_v34, %v625_v59  ;;  %710 = vadd.xlane.f32.xlu0 %v693_v56  ;;  %v673_v63 = vmax.f32 %v623_v54, 0.0 }
 0x1e6   : > { %v676_v61 = vmax.f32 %v634_v58, 0.0  ;;  %v698_v62 = vmul.f32 %v1133_v40, %v675_v57 }
 0x1e7   : > { %v674_v0 = vmax.f32 %v626_v60, 0.0  ;;  %v696_v7 = vmul.f32 %v1133_v40, %v673_v63 }
 0x1e8   : > { %v699_v1 = vmul.f32 %v1133_v40, %v676_v61 }
 0x1e9   : > { %v957_v2 = vpop.f32.mrb[8].mxu1  ;;  %720 = vadd.xlane.f32.xlu0 %v698_v62  ;;  %v697_v11 = vmul.f32 %v1133_v40, %v674_v0 }
 0x1ea   : > { %v647_v3 = vadd.f32 %v957_v2, %v1126_v34  ;;  %722 = vadd.xlane.f32.xlu1 %v699_v1  ;;  %v638_v4 = vpop.f32.mrb[9].mxu1 }
 0x1eb   : > { %v639_v5 = vadd.f32 %v1126_v34, %v638_v4  ;;  %v958_v6 = vpop.f32.mrb[10].mxu1 }
 0x1ec   : > { %v679_v8 = vmax.f32 %v647_v3, 0.0  ;;  %v650_v9 = vadd.f32 %v958_v6, %v1126_v34  ;;  %v641_v10 = vpop.f32.mrb[11].mxu1 }
 0x1ed   : > { %v642_v12 = vadd.f32 %v1126_v34, %v641_v10  ;;  %716 = vadd.xlane.f32.xlu0 %v696_v7  ;;  %v677_v15 = vmax.f32 %v639_v5, 0.0 }
 0x1ee   : > { %v680_v13 = vmax.f32 %v650_v9, 0.0  ;;  %718 = vadd.xlane.f32.xlu1 %v697_v11  ;;  %v702_v14 = vmul.f32 %v1133_v40, %v679_v8 }
 0x1ef   : > { %v678_v16 = vmax.f32 %v642_v12, 0.0  ;;  %v700_v23 = vmul.f32 %v1133_v40, %v677_v15 }
 0x1f0   : > { %v703_v17 = vmul.f32 %v1133_v40, %v680_v13 }
 0x1f1   : > { %v961_v18 = vpop.f32.mrb[12].mxu1  ;;  %728 = vadd.xlane.f32.xlu0 %v702_v14  ;;  %v701_v25 = vmul.f32 %v1133_v40, %v678_v16 }
 0x1f2   : > { %v654_v19 = vpop.f32.mrb[13].mxu1  ;;  %730 = vadd.xlane.f32.xlu1 %v703_v17  ;;  %v663_v20 = vadd.f32 %v961_v18, %v1126_v34 }
 0x1f3   : > { %v655_v21 = vadd.f32 %v1126_v34, %v654_v19  ;;  %v962_v22 = vpop.f32.mrb[14].mxu1 }
 0x1f4   : > { %v657_v24 = vpop.f32.mrb[15].mxu1  ;;  %v666_v27 = vadd.f32 %v962_v22, %v1126_v34  ;;  %v683_v29 = vmax.f32 %v663_v20, 0.0 }
 0x1f5   : > { %v681_v26 = vmax.f32 %v655_v21, 0.0  ;;  %v658_v28 = vadd.f32 %v1126_v34, %v657_v24  ;;  %724 = vadd.xlane.f32.xlu0 %v700_v23 }
 0x1f6   : > { %726 = vadd.xlane.f32.xlu1 %v701_v25  ;;  %v684_v32 = vmax.f32 %v666_v27, 0.0  ;;  %v706_v35 = vmul.f32 %v1133_v40, %v683_v29 }
 0x1f7   : > { %v682_v30 = vmax.f32 %v658_v28, 0.0  ;;  %v704_v31 = vmul.f32 %v1133_v40, %v681_v26 }
 0x1f8   : > { %v707_v36 = vmul.f32 %v1133_v40, %v684_v32 }
 0x1f9   : > { %732 = vadd.xlane.f32.xlu0 %v704_v31  ;;  %v705_v33 = vmul.f32 %v1133_v40, %v682_v30 }
 0x1fb   : > { %734 = vadd.xlane.f32.xlu1 %v705_v33 }
 0x1fd   : > { %736 = vadd.xlane.f32.xlu0 %v706_v35 }
 0x1ff   : > { %738 = vadd.xlane.f32.xlu1 %v707_v36 }
 0x26d   : > { %v713_v34 = vpop.xlane.xlu1 %712 }
 0x26e   : > { %v749_v38 = vadd.f32 %v864_v37, %v713_v34  ;;  %v709_v39 = vpop.xlane.xlu0 %708 }
 0x26f   : > { %v747_v41 = vadd.f32 %v864_v37, %v709_v39 }
 0x270   : > { %766 = vst.msk [vmem:[%s1170_s29 + $0x10] sm:$0xff] %vm763_vm0, %v749_v38 }
 0x271   : > { %764 = vst.msk [vmem:[%s1170_s29] sm:$0xff] %vm763_vm0, %v747_v41  ;;  %v715_v40 = vpop.xlane.xlu1 %714 }
 0x272   : > { %v750_v42 = vadd.f32 %v864_v37, %v715_v40  ;;  %v711_v43 = vpop.xlane.xlu0 %710 }
 0x273   : > { %v748_v44 = vadd.f32 %v864_v37, %v711_v43 }
 0x274   : > { %767 = vst.msk [vmem:[%s1170_s29 + $0x18] sm:$0xff] %vm763_vm0, %v750_v42 }
 0x275   : > { %765 = vst.msk [vmem:[%s1170_s29 + $0x8] sm:$0xff] %vm763_vm0, %v748_v44 }
 0x276   : > { %v721_v45 = vpop.xlane.xlu0 %720 }
 0x277   : > { %v753_v46 = vadd.f32 %v864_v37, %v721_v45  ;;  %v723_v47 = vpop.xlane.xlu1 %722 }
 0x278   : > { %v754_v48 = vadd.f32 %v864_v37, %v723_v47 }
 0x279   : > { %770 = vst.msk [vmem:[%s1170_s29 + $0x30] sm:$0xff] %vm763_vm0, %v753_v46 }
 0x27a   : > { %771 = vst.msk [vmem:[%s1170_s29 + $0x38] sm:$0xff] %vm763_vm0, %v754_v48  ;;  %v717_v49 = vpop.xlane.xlu0 %716 }
 0x27b   : > { %v751_v50 = vadd.f32 %v864_v37, %v717_v49  ;;  %v719_v51 = vpop.xlane.xlu1 %718 }
 0x27c   : > { %v752_v52 = vadd.f32 %v864_v37, %v719_v51 }
 0x27d   : > { %768 = vst.msk [vmem:[%s1170_s29 + $0x20] sm:$0xff] %vm763_vm0, %v751_v50 }
 0x27e   : > { %769 = vst.msk [vmem:[%s1170_s29 + $0x28] sm:$0xff] %vm763_vm0, %v752_v52  ;;  %v729_v53 = vpop.xlane.xlu0 %728 }
 0x27f   : > { %v757_v54 = vadd.f32 %v864_v37, %v729_v53  ;;  %v731_v55 = vpop.xlane.xlu1 %730 }
 0x280   : > { %v758_v56 = vadd.f32 %v864_v37, %v731_v55 }
 0x281   : > { %774 = vst.msk [vmem:[%s1170_s29 + $0x50] sm:$0xff] %vm763_vm0, %v757_v54 }
 0x282   : > { %775 = vst.msk [vmem:[%s1170_s29 + $0x58] sm:$0xff] %vm763_vm0, %v758_v56  ;;  %v725_v57 = vpop.xlane.xlu0 %724 }
 0x283   : > { %v755_v58 = vadd.f32 %v864_v37, %v725_v57  ;;  %v727_v59 = vpop.xlane.xlu1 %726 }
 0x284   : > { %v756_v60 = vadd.f32 %v864_v37, %v727_v59 }
 0x285   : > { %772 = vst.msk [vmem:[%s1170_s29 + $0x40] sm:$0xff] %vm763_vm0, %v755_v58 }
 0x286   : > { %773 = vst.msk [vmem:[%s1170_s29 + $0x48] sm:$0xff] %vm763_vm0, %v756_v60  ;;  %v733_v61 = vpop.xlane.xlu0 %732 }
 0x287   : > { %v759_v62 = vadd.f32 %v864_v37, %v733_v61 }
 0x288   : > { %v735_v63 = vpop.xlane.xlu1 %734 }
 0x289   : > { %776 = vst.msk [vmem:[%s1170_s29 + $0x60] sm:$0xff] %vm763_vm0, %v759_v62  ;;  %v760_v0 = vadd.f32 %v864_v37, %v735_v63 }
 0x28a   : > { %v737_v1 = vpop.xlane.xlu0 %736 }
 0x28b   : > { %777 = vst.msk [vmem:[%s1170_s29 + $0x68] sm:$0xff] %vm763_vm0, %v760_v0  ;;  %v761_v2 = vadd.f32 %v864_v37, %v737_v1 }
 0x28c   : > { %v739_v3 = vpop.xlane.xlu1 %738 }
 0x28d   : > { %778 = vst.msk [vmem:[%s1170_s29 + $0x70] sm:$0xff] %vm763_vm0, %v761_v2  ;;  %v762_v4 = vadd.f32 %v864_v37, %v739_v3 }
 0x28f   : > { %779 = vst.msk [vmem:[%s1170_s29 + $0x78] sm:$0xff] %vm763_vm0, %v762_v4 }
 0x290 PF: > { %s19_s26 = sadd.s32 1, %s993_s26  }
 0x291   : > { %p16_p4 = scmp.ge.s32.totalorder %s19_s26, 4  }
 0x293   :  { %18 = sbr.rel (!%p16_p4) target bundleno = 3 (0x3), region = 78 }

</bundles_post_ra>
